<compile_context>
chip_gen: v7x
topology: tpu7x:2x2x1
jax: 0.10.0
libtpu: 0.0.40
codegen_flags: <defaults>
</compile_context>

<pallas_src>
import jax
import jax.numpy as jnp
from jax.experimental import pallas as pl
from jax.experimental.pallas import tpu as pltpu

_MIB = 1024 * 1024
# Below this much activation data, pallas_call launch overhead dwarfs the
# data movement -> let XLA fuse the multiply into the neighboring op.
_FUSED_DISPATCH_BYTES = 2 * _MIB
# Byte-based tile cap: keeps every dtype / H*W near the HBM-roofline plateau
# and bounds VMEM use regardless of mask_size.
_MAX_TILE_BYTES = 8 * _MIB
# Only split a fits-in-one-tile problem across two TensorCores (v7x megacore)
# when each half is big enough to amortize the ~0.35us/step overhead.
_SPLIT_MIN_BYTES = 2 * _MIB


def _mask_kernel(m_ref, x_ref, o_ref):
    # m_ref: (1, HW) resident mask row; x_ref / o_ref: (tile_rows, HW).
    # Row-broadcast multiply on the VPU; HW = full last dim (lane-dense for
    # H*W multiples of 128, e.g. 1024) so stores are full-width vst.
    o_ref[...] = x_ref[...] * m_ref[...]


def _tpu_info():
    try:
        return pltpu.get_tpu_info()
    except Exception:
        return None


def _vmem_capacity_bytes() -> int:
    info = _tpu_info()
    for name in ("vmem_capacity_bytes", "vmem_bytes", "vmem_size_bytes"):
        cap = getattr(info, name, None)
        if cap:
            return int(cap)
    return 64 * _MIB  # unknown -> assume smallest (v7x); OOM-safe


def _num_tensorcores() -> int:
    info = _tpu_info()
    for name in ("num_tensorcores", "tensorcore_count", "num_cores",
                 "cores_per_chip"):
        n = getattr(info, name, None)
        if n:
            return int(n)
    return 1  # unknown -> conservative: never split for megacore


def _choose_tile_rows(rows: int, hw: int, itemsize: int,
                      max_tile_bytes=None) -> int:
    """Rows-per-tile: sublane-aligned, byte-capped, VMEM-budget aware."""
    sub = {4: 8, 2: 16, 1: 32}.get(itemsize, 8)       # sublane packing
    bytes_per_row = hw * itemsize

    # Generation-aware budget: ~3/8 of physical VMEM for the double-buffered
    # in+out tiles (v7x 64 MiB -> 24 MiB; v5e/v6e 128 MiB -> 48 MiB).
    budget = min((_vmem_capacity_bytes() * 3) // 8, 48 * _MIB)
    tile_cap_bytes = min(_MAX_TILE_BYTES, max(bytes_per_row, budget // 4))
    if max_tile_bytes is not None:
        tile_cap_bytes = min(tile_cap_bytes, max_tile_bytes)

    cap = max(sub, (tile_cap_bytes // bytes_per_row) // sub * sub)

    if rows <= cap:
        # Fits in a single tile. Split into two blocks only when there are
        # actually >=2 TensorCores and each half amortizes the step cost.
        if (_num_tensorcores() >= 2
                and (rows * bytes_per_row) // 2 >= _SPLIT_MIN_BYTES):
            half = -(-rows // 2)
            half = -(-half // sub) * sub
            return max(sub, min(cap, half))
        return rows  # one block == full array dim (no (8,128) constraint)
    return cap


def apply_mask_pallas(x_nchw, mask, *, max_tile_bytes=None):
    """Pallas path. x_nchw: (N, C, H, W); mask: (1, 1, H, W)."""
    N, C, H, W = x_nchw.shape
    assert mask.shape == (1, 1, H, W)

    # PyTorch type promotion: M (f32 param) * x -> result_type(M, x).
    out_dtype = jnp.result_type(x_nchw.dtype, mask.dtype)
    HW = H * W
    rows = N * C
    itemsize = jnp.dtype(out_dtype).itemsize

    x2d = x_nchw.reshape(rows, HW).astype(out_dtype)
    m2d = mask.reshape(1, HW).astype(out_dtype)

    tile_rows = _choose_tile_rows(rows, HW, itemsize, max_tile_bytes)
    num_blocks = pl.cdiv(rows, tile_rows)
    # No host-side padding: a ragged final block is masked on store by Pallas.

    tile_bytes = tile_rows * HW * itemsize
    mask_bytes = HW * itemsize
    vmem_limit = int(min(
        max(4 * tile_bytes + 4 * mask_bytes + 2 * _MIB, 8 * _MIB),
        (_vmem_capacity_bytes() * 3) // 4,
    ))

    cost = pl.CostEstimate(
        flops=rows * HW,
        transcendentals=0,
        bytes_accessed=2 * rows * HW * itemsize + mask_bytes,
    )

    out2d = pl.pallas_call(
        _mask_kernel,
        out_shape=jax.ShapeDtypeStruct((rows, HW), out_dtype),
        grid_spec=pltpu.PrefetchScalarGridSpec(
            num_scalar_prefetch=0,
            grid=(num_blocks,),
            in_specs=[
                pl.BlockSpec((1, HW), lambda i: (0, 0)),          # mask, resident
                pl.BlockSpec((tile_rows, HW), lambda i: (i, 0)),  # x tile
            ],
            out_specs=pl.BlockSpec((tile_rows, HW), lambda i: (i, 0)),
        ),
        compiler_params=pltpu.CompilerParams(
            dimension_semantics=("parallel",),
            vmem_limit_bytes=vmem_limit,
        ),
        cost_estimate=cost,
    )(m2d, x2d)

    return out2d.reshape(N, C, H, W)


def apply_mask_fused(x_nchw, mask):
    """For tiny shapes: lets XLA fuse the multiply (no kernel launch)."""
    return (mask * x_nchw)


def apply_mask(x_nchw, mask):
    """Size-based dispatch between fused multiply and the Pallas kernel."""
    N, C, H, W = x_nchw.shape
    out_dtype = jnp.result_type(x_nchw.dtype, mask.dtype)
    nbytes = N * C * H * W * jnp.dtype(out_dtype).itemsize
    if nbytes < _FUSED_DISPATCH_BYTES:
        return apply_mask_fused(x_nchw, mask)
    return apply_mask_pallas(x_nchw, mask)


if __name__ == "__main__":
    key = jax.random.PRNGKey(0)
    k_x, k_m, k_x2 = jax.random.split(key, 3)

    # Module default mask_size = (1, 32, 32) -> parameter M shape (1, 1, 32, 32)
    N, C, H, W = 2, 4, 32, 32
    x = jax.random.normal(k_x, (N, C, H, W), dtype=jnp.float32)
    # Module init is ones_; a non-trivial mask exercises the broadcast multiply.
    mask = jax.random.normal(k_m, (1, 1, H, W), dtype=jnp.float32)

    # 1) Pallas path directly (single full-rows block, no padding).
    out = jax.block_until_ready(apply_mask_pallas(x, mask))
    ref = mask * x
    assert out.shape == x.shape
    assert jnp.allclose(out, ref, atol=1e-6, rtol=1e-6)

    # 2) Pallas path with a forced small tile: multi-block grid plus a ragged
    #    final block (rows = 60, tile_rows = 16 -> last block is partial),
    #    relying on Pallas' masked-store handling (no host pad/slice).
    N2, C2 = 3, 20  # rows = 60
    x_big = jax.random.normal(k_x2, (N2, C2, H, W), dtype=jnp.float32)
    out_big = jax.block_until_ready(
        apply_mask_pallas(x_big, mask, max_tile_bytes=16 * H * W * 4))
    assert jnp.allclose(out_big, mask * x_big, atol=1e-6, rtol=1e-6)

    # 3) Dispatcher: tiny input routes to the fused multiply.
    out_disp = jax.block_until_ready(apply_mask(x, mask))
    assert jnp.allclose(out_disp, ref, atol=1e-6, rtol=1e-6)

    print("KERNEL_OK")
</pallas_src>

<mosaic_0001>
module attributes {stable_mosaic.version = 11 : i64} {
  func.func @_mask_kernel(%arg0: i32, %arg1: memref<1x1024xf32, #tpu.memory_space<vmem>>, %arg2: memref<8x1024xf32, #tpu.memory_space<vmem>>, %arg3: memref<8x1024xf32, #tpu.memory_space<vmem>>) attributes {dimension_semantics = [#tpu.dimension_semantics<parallel>], iteration_bounds = array<i64: 1>, scalar_prefetch = 0 : i64, scratch_operands = 0 : i64, tpu.core_type = #tpu.core_type<tc>, window_params = [{pipeline_mode = #tpu.pipeline_mode<synchronous>, transform_indices = @transform_0, window_bounds = array<i64: 1, 1024>}, {transform_indices = @transform_1, window_bounds = array<i64: 8, 1024>}, {transform_indices = @transform_2, window_bounds = array<i64: 8, 1024>}]} {
    %c0 = arith.constant 0 : index
    %c0_0 = arith.constant 0 : index
    %0 = vector.load %arg2[%c0, %c0_0] : memref<8x1024xf32, #tpu.memory_space<vmem>>, vector<8x1024xf32>
    %c0_1 = arith.constant 0 : index
    %c0_2 = arith.constant 0 : index
    %1 = vector.load %arg1[%c0_1, %c0_2] : memref<1x1024xf32, #tpu.memory_space<vmem>>, vector<1x1024xf32>
    %2 = vector.broadcast %1 : vector<1x1024xf32> to vector<8x1024xf32>
    %3 = arith.mulf %0, %2 : vector<8x1024xf32>
    %c0_3 = arith.constant 0 : index
    %c0_4 = arith.constant 0 : index
    %4 = vector.load %arg3[%c0_3, %c0_4] : memref<8x1024xf32, #tpu.memory_space<vmem>>, vector<8x1024xf32>
    tpu.vector_store %arg3[%c0_3, %c0_4], %3 {strides = array<i32>} : memref<8x1024xf32, #tpu.memory_space<vmem>>, vector<8x1024xf32>,
    return
  }
  func.func @transform_0(%arg0: i32) -> (i32, i32) {
    %c0_i32 = arith.constant 0 : i32
    %c0_i32_0 = arith.constant 0 : i32
    %c0_i32_1 = arith.constant 0 : i32
    return %c0_i32, %c0_i32_0 : i32, i32
  }
  func.func @transform_1(%arg0: i32) -> (i32, i32) {
    %c0_i32 = arith.constant 0 : i32
    %c0_i32_0 = arith.constant 0 : i32
    return %arg0, %c0_i32 : i32, i32
  }
  func.func @transform_2(%arg0: i32) -> (i32, i32) {
    %c0_i32 = arith.constant 0 : i32
    %c0_i32_0 = arith.constant 0 : i32
    return %arg0, %c0_i32 : i32, i32
  }
}

</mosaic_0001>

<bundles_post_ra>
// kernel: tpu_custom_call.1
= control target key start
LH: loop header
LB: loop body
LE: loop exit
PB: predicated region body
PF: predicated region fallthrough
CT: control target
= control target key end

     0   :  { %7 = vsyncpa [#allocation3], 0  ;;  %s247_s0 = inlined_call_operand.hbm [shape: f32[1,1024], index: 0, kind: input, shape index: {}]   ;;  %s248_s1 = inlined_call_operand.hbm [shape: f32[8,1024], index: 1, kind: input, shape index: {}]   ;;  %s249_s2 = inlined_call_operand.hbm [shape: f32[8,1024], index: 2, kind: output, shape index: {}]  }
   0x1   :  { %8 = vsyncpa [#allocation6], 0 }
   0x2   :  { %9 = vsyncpa [#allocation4], 0  ;;  %s193_s9 = smov [#allocation2]   ;;  %s194_s11 = smov [#allocation5]  }
   0x3   :  { %s16_s10 = sshll.u32 %s193_s9, 4  ;;  %s26_s12 = sshll.u32 %s194_s11, 4  ;;  %s17_s10 = int_to_ptr.vmem [resolvable:$true] %s16_s10  ;;  %s27_s12 = int_to_ptr.vmem [resolvable:$true] %s26_s12 }
   0x4   :  { %s121_s15 = scalar_lea.hbm %s247_s0, 128 }
   0x5   :  { %p122_p0 = scmp.ne.s32.totalorder %s247_s0, %s121_s15  ;;  %p125_p1 = scmp.lt.u32.totalorder %s121_s15, %s247_s0 }
   0x7   :  { %p127_p2 = pnand %p125_p1, %p122_p0 }
   0x9   :  { %130 = shalt.err (!%p127_p2)
}
   0xa   :  { %s131_s20 = scalar_lea.vmem %s17_s10, 128  ;;  %p136_p4 = scmp.lt.s32.totalorder %s17_s10, %s17_s10 }
   0xb   :  { %p132_p3 = scmp.ne.s32.totalorder %s17_s10, %s131_s20  ;;  %p137_p5 = scmp.lt.s32.totalorder %s131_s20, %s131_s20 }
   0xd   :  { %p138_p6 = por %p137_p5, %p136_p4 }
   0xf   :  { %p139_p7 = pnand %p138_p6, %p132_p3 }
  0x11   :  { %142 = shalt.err (!%p139_p7)
}
  0x12   :  { %19 = dma.hbm_to_vmem [thread:$0]  %s247_s0, 128, %s17_s10, [#allocation3]  }
  0x13   :  { %s143_s25 = scalar_lea.hbm %s248_s1, 1024 }
  0x14   :  { %p144_p8 = scmp.ne.s32.totalorder %s248_s1, %s143_s25  ;;  %p147_p9 = scmp.lt.u32.totalorder %s143_s25, %s248_s1 }
  0x16   :  { %p149_p10 = pnand %p147_p9, %p144_p8 }
  0x18   :  { %152 = shalt.err (!%p149_p10)
}
  0x19   :  { %s153_s30 = scalar_lea.vmem %s27_s12, 1024  ;;  %p158_p12 = scmp.lt.s32.totalorder %s27_s12, %s27_s12 }
  0x1a   :  { %p154_p11 = scmp.ne.s32.totalorder %s27_s12, %s153_s30  ;;  %p159_p13 = scmp.lt.s32.totalorder %s153_s30, %s153_s30 }
  0x1c   :  { %p160_p0 = por %p159_p13, %p158_p12 }
  0x1e   :  { %p161_p1 = pnand %p160_p0, %p154_p11 }
  0x20   :  { %164 = shalt.err (!%p161_p1)
}
  0x21   :  { %29 = dma.hbm_to_vmem [thread:$0]  %s248_s1, 1024, %s27_s12, [#allocation6]  }
  0x22   :  { %187 = dma.done.wait [#allocation3], 128  }
  0x23   :  { %188 = vsyncadd [#allocation3], 4294967168 }
  0x24   :  { %189 = dma.done.wait [#allocation6], 1024  }
  0x25   :  { %190 = vsyncadd [#allocation6], 4294966272  ;;  %v46_v0 = vlaneseq  ;;  %v36_v10 = vld [vmem:[#allocation5] sm:$0xff]  ;;  %v44_v11 = vld [vmem:[#allocation2] sm:$0xff]  ;;  %s195_s1 = smov [#allocation7]  }
  0x26   :  { %v37_v12 = vld [vmem:[#allocation5 + $0x8] sm:$0xff]  ;;  %v38_v15 = vld [vmem:[#allocation5 + $0x10] sm:$0xff]  ;;  %v39_v17 = vld [vmem:[#allocation5 + $0x18] sm:$0xff]  ;;  %s108_s4 = sshll.u32 %s195_s1, 4  ;;  %s109_s4 = int_to_ptr.vmem [resolvable:$true] %s108_s4 }
  0x27   :  { %v47_v1 = vshrl.u32 %v46_v0, 7  ;;  %v40_v19 = vld [vmem:[#allocation5 + $0x20] sm:$0xff]  ;;  %v41_v21 = vld [vmem:[#allocation5 + $0x28] sm:$0xff]  ;;  %v42_v23 = vld [vmem:[#allocation5 + $0x30] sm:$0xff]  ;;  %s165_s5 = scalar_lea.vmem %s109_s4, 1024  ;;  %p170_p3 = scmp.lt.s32.totalorder %s109_s4, %s109_s4 }
  0x28   :  { %v43_v25 = vld [vmem:[#allocation5 + $0x38] sm:$0xff]  ;;  %p166_p2 = scmp.ne.s32.totalorder %s109_s4, %s165_s5  ;;  %p171_p4 = scmp.lt.s32.totalorder %s165_s5, %s165_s5 }
  0x29   :  { %v48_v2 = vsub.s32 0, %v47_v1  ;;  %v52_v3 = vsub.s32 1, %v47_v1  ;;  %v56_v4 = vsub.s32 2, %v47_v1  ;;  %v60_v5 = vsub.s32 3, %v47_v1 }
  0x2a   :  { %v64_v6 = vsub.s32 4, %v47_v1  ;;  %v68_v7 = vsub.s32 5, %v47_v1  ;;  %v72_v8 = vsub.s32 6, %v47_v1  ;;  %v76_v9 = vsub.s32 7, %v47_v1  ;;  %p172_p5 = por %p171_p4, %p170_p3 }
  0x2b   :  { %v49_v13 = vrot.slane %v44_v11, %v48_v2  ;;  %v53_v14 = vrot.slane %v44_v11, %v52_v3  ;;  %v57_v16 = vrot.slane %v44_v11, %v56_v4  ;;  %v61_v18 = vrot.slane %v44_v11, %v60_v5 }
  0x2c   :  { %v65_v20 = vrot.slane %v44_v11, %v64_v6  ;;  %v69_v22 = vrot.slane %v44_v11, %v68_v7  ;;  %v73_v24 = vrot.slane %v44_v11, %v72_v8  ;;  %v77_v26 = vrot.slane %v44_v11, %v76_v9  ;;  %p173_p6 = pnand %p172_p5, %p166_p2 }
  0x2d   :  { %v86_v27 = vmul.f32 %v49_v13, %v36_v10  ;;  %v87_v28 = vmul.f32 %v53_v14, %v37_v12  ;;  %v88_v29 = vmul.f32 %v57_v16, %v38_v15  ;;  %v89_v30 = vmul.f32 %v61_v18, %v39_v17 }
  0x2e   :  { %v90_v31 = vmul.f32 %v65_v20, %v40_v19  ;;  %v91_v32 = vmul.f32 %v69_v22, %v41_v21  ;;  %v92_v33 = vmul.f32 %v73_v24, %v42_v23  ;;  %v93_v34 = vmul.f32 %v77_v26, %v43_v25 }
  0x2f   :  { %94 = vst [vmem:[#allocation7] sm:$0xff] %v86_v27  ;;  %95 = vst [vmem:[#allocation7 + $0x8] sm:$0xff] %v87_v28 }
  0x30   :  { %96 = vst [vmem:[#allocation7 + $0x10] sm:$0xff] %v88_v29  ;;  %97 = vst [vmem:[#allocation7 + $0x18] sm:$0xff] %v89_v30 }
  0x31   :  { %98 = vst [vmem:[#allocation7 + $0x20] sm:$0xff] %v90_v31  ;;  %99 = vst [vmem:[#allocation7 + $0x28] sm:$0xff] %v91_v32 }
  0x32   :  { %100 = vst [vmem:[#allocation7 + $0x30] sm:$0xff] %v92_v33  ;;  %101 = vst [vmem:[#allocation7 + $0x38] sm:$0xff] %v93_v34 }
  0x33   :  { %176 = shalt.err (!%p173_p6)
}
  0x34   :  { %s177_s8 = scalar_lea.hbm %s249_s2, 1024 }
  0x35   :  { %p178_p7 = scmp.ne.s32.totalorder %s249_s2, %s177_s8  ;;  %p181_p8 = scmp.lt.u32.totalorder %s177_s8, %s249_s2 }
  0x37   :  { %p183_p9 = pnand %p181_p8, %p178_p7 }
  0x39   :  { %186 = shalt.err (!%p183_p9)
}
  0x3a   :  { %111 = dma.vmem_to_hbm [thread:$0]  %s109_s4, 1024, %s249_s2, [#allocation4]  }
  0x3b   :  { %191 = dma.done.wait [#allocation4], 1024  }
  0x3c   :  { %192 = vsyncadd [#allocation4], 4294966272 }
  0x3d   :  { %115 = vsyncpa [#allocation3], 1 }
  0x3e   :  { %116 = vsyncpa [#allocation6], 1 }
  0x3f   :  { %117 = vsyncpa [#allocation4], 1 }

</bundles_post_ra>
